<compile_context>
chip_gen: v5e
topology: v5e:2x2
jax: 0.10.0
libtpu: 0.0.40
codegen_flags: <defaults>
</compile_context>

<pallas_src>
import functools

import jax
import jax.numpy as jnp
import numpy as np
from jax.experimental import pallas as pl
from jax.experimental.pallas import tpu as pltpu


def _greedy_ctc_kernel(scal_ref, em_ref, out_ref, *, blank: int):
    """One time-tile: argmax over labels, drop consecutive dups / blanks / padding.

    scal_ref (SMEM, int32): [0] = valid length T, [1 + i] = argmax of the frame just
    before tile i (-1 for tile 0, i.e. an unconditional run start).
    em_ref: (C, tile_t) emission block.  out_ref: (1, tile_t) packed labels (-1 = drop).
    """
    i = pl.program_id(0)
    tile_t = out_ref.shape[1]

    em = em_ref[...].astype(jnp.float32)          # (C, tile_t); upcast keeps v5e VPU happy
    C = em.shape[0]

    # argmax over labels (sublane axis) with first-occurrence tie-break (== torch/np).
    # NOTE: an all-NaN frame would yield the sentinel C (torch.argmax differs); benign
    # for well-formed log-probs and for the garbage columns of a ragged last block.
    max_val = jnp.max(em, axis=0, keepdims=True)                            # (1, tile_t)
    lbl = jax.lax.broadcasted_iota(jnp.int32, em.shape, 0)                  # (C, tile_t)
    idx = jnp.min(jnp.where(em == max_val, lbl, C), axis=0, keepdims=True)  # (1, tile_t)

    # prev[t] = idx[t-1]. The lane roll wraps inside the tile, so lane 0 is patched
    # with the prefetched previous-tile boundary argmax.
    prev = pltpu.roll(idx, shift=1, axis=1)                                 # (1, tile_t)
    lane = jax.lax.broadcasted_iota(jnp.int32, idx.shape, 1)                # (1, tile_t)
    prev = jnp.where(lane == 0, scal_ref[1 + i], prev)

    # unique_consecutive + drop blank + mask the ragged / padded tail (dynamic length).
    t_valid = scal_ref[0]
    global_t = lane + i * tile_t
    keep = (idx != prev) & (idx != blank) & (global_t < t_valid)

    # Single dense lane-major store: kept label index, -1 for dropped frames.
    out_ref[...] = jnp.where(keep, idx, -1)


@functools.partial(jax.jit, static_argnames=("blank", "tile_t"))
def greedy_ctc_packed(emission: jax.Array, *, blank: int = 0, tile_t: int = 32768,
                      length=None):
    """Returns a (T,) int32 array: kept label index per frame, -1 for dropped frames.

    `emission` is (T, C) float32/bfloat16.  `length` (optional, may be traced) is the
    true number of valid frames — useful when the caller pads T to static buckets to
    avoid per-length recompiles; defaults to T.
    """
    T, C = emission.shape

    # Tile sizing: one full-extent block when T is small (no 128-rounding), otherwise
    # lane-aligned big tiles so each block is multiple-MiB and DMA-overhead-free.
    tile_t = min(tile_t, T)
    if tile_t < T:
        tile_t = max(128, (tile_t // 128) * 128)
    num_tiles = pl.cdiv(T, tile_t)

    # Compute layout for the kernel: (C, T).  One extra HBM pass; retained on purpose
    # (see header comment) because it keeps blocks lane-dense and all in-kernel work
    # comfortably under the DMA time on every generation.
    em_t = jnp.transpose(emission)                                          # (C, T)

    # Scalar-prefetch buffer (SMEM): [t_valid, bprev_0=-1, bprev_1, ...].
    # Boundary argmaxes come from contiguous rows of the *original* emission (cheap),
    # so the time grid axis stays fully parallel (no sequential carry).
    t_valid = jnp.asarray(T if length is None else length, jnp.int32)
    head = jnp.stack([t_valid, jnp.asarray(-1, jnp.int32)])
    if num_tiles > 1:
        brows = emission[tile_t - 1 : (num_tiles - 1) * tile_t : tile_t]    # (num_tiles-1, C)
        scal = jnp.concatenate([head, jnp.argmax(brows, axis=-1).astype(jnp.int32)])
    else:
        scal = head

    packed = pl.pallas_call(
        functools.partial(_greedy_ctc_kernel, blank=blank),
        out_shape=jax.ShapeDtypeStruct((1, T), jnp.int32),
        grid_spec=pltpu.PrefetchScalarGridSpec(
            num_scalar_prefetch=1,
            grid=(num_tiles,),
            in_specs=[pl.BlockSpec((C, tile_t), lambda i, scal: (0, i))],
            out_specs=pl.BlockSpec((1, tile_t), lambda i, scal: (0, i)),
        ),
        compiler_params=pltpu.CompilerParams(
            dimension_semantics=("parallel",),
            # Explicit cap: above v5e's 16 MiB scoped default, below v7x's 64 MiB
            # physical VMEM; ~13 MiB actually needed at the default tile size.
            vmem_limit_bytes=48 * 1024 * 1024,
        ),
    )(scal, em_t)

    return packed[0]


class GreedyCTCDecoderPallas:
    """JAX/Pallas equivalent of the PyTorch GreedyCTCDecoder."""

    def __init__(self, labels, blank: int = 0):
        self.labels = labels
        self.blank = blank

    def __call__(self, emission: jax.Array):
        packed = greedy_ctc_packed(emission, blank=self.blank)
        packed = np.asarray(jax.device_get(packed))   # single length-T i32 transfer
        kept = packed[packed >= 0]                    # vectorized filter, no Python loop
        # On-device compaction (prefix-sum + scatter) would shrink D2H to num_kept ints;
        # kept host-side here since D2H latency is overhead-dominated at typical T.
        # TODO(synk): label->string join / '|' word-split has no Pallas equivalent; host-side.
        joined = " ".join(self.labels[int(i)] for i in kept)
        return joined.replace("|", " ").strip().split()


def _reference_decode(emission_np, labels, blank):
    idx = np.argmax(emission_np, axis=-1)
    collapsed = [int(idx[0])] + [
        int(idx[t]) for t in range(1, len(idx)) if idx[t] != idx[t - 1]
    ]
    kept = [i for i in collapsed if i != blank]
    joined = " ".join(labels[i] for i in kept)
    return joined.replace("|", " ").strip().split()


def _decode_packed(packed, labels):
    p = np.asarray(jax.device_get(packed))
    kept = [int(i) for i in p[p >= 0]]
    joined = " ".join(labels[i] for i in kept)
    return joined.replace("|", " ").strip().split()


if __name__ == "__main__":
    C = 32
    # deterministic label set: blank='-', '|' is the word separator
    labels = ["-", "|"] + [chr(ord("a") + i) for i in range(26)] + ["0", "1", "2", "3"]
    assert len(labels) == C

    decoder = GreedyCTCDecoderPallas(labels, blank=0)

    # 1) Small single-tile case: full-extent (C, T) block, no 128-rounding.
    T = 16
    emission = jax.random.normal(jax.random.PRNGKey(0), (T, C), dtype=jnp.float32)
    packed = greedy_ctc_packed(emission, blank=0)
    jax.block_until_ready(packed)
    words = decoder(emission)
    ref_words = _reference_decode(
        np.asarray(jax.device_get(emission), np.float32), labels, 0)
    assert words == ref_words, f"mismatch: {words} vs {ref_words}"

    # 2) Multi-tile + ragged last block + tile-boundary prev patch.  The small tile_t
    #    here only exercises tiling at test size; the production default is 32768.
    T2 = 1000
    emission2 = jax.random.normal(jax.random.PRNGKey(1), (T2, C), dtype=jnp.float32)
    packed2 = greedy_ctc_packed(emission2, blank=0, tile_t=256)
    jax.block_until_ready(packed2)
    words2 = _decode_packed(packed2, labels)
    ref2 = _reference_decode(
        np.asarray(jax.device_get(emission2), np.float32), labels, 0)
    assert words2 == ref2, f"tiled mismatch: {words2} vs {ref2}"

    # 3) bf16 emissions (halves HBM read traffic); default tile (single block here).
    emission3 = emission2.astype(jnp.bfloat16)
    packed3 = greedy_ctc_packed(emission3, blank=0)
    jax.block_until_ready(packed3)
    words3 = _decode_packed(packed3, labels)
    ref3 = _reference_decode(
        np.asarray(jax.device_get(emission3)).astype(np.float32), labels, 0)
    assert words3 == ref3, f"bf16 mismatch: {words3} vs {ref3}"

    print("KERNEL_OK")
</pallas_src>

<mosaic_0001>
module attributes {stable_mosaic.version = 11 : i64} {
  func.func @_greedy_ctc_kernel(%arg0: i32, %arg1: memref<2xi32, #tpu.memory_space<smem>>, %arg2: memref<32x16xf32, #tpu.memory_space<vmem>>, %arg3: memref<1x16xi32, #tpu.memory_space<vmem>>) attributes {dimension_semantics = [#tpu.dimension_semantics<parallel>], iteration_bounds = array<i64: 1>, scalar_prefetch = 1 : i64, scratch_operands = 0 : i64, tpu.core_type = #tpu.core_type<tc>, window_params = [{transform_indices = @transform_0, window_bounds = array<i64: 32, 16>}, {transform_indices = @transform_1, window_bounds = array<i64: 1, 16>}]} {
    %c0 = arith.constant 0 : index
    %c0_0 = arith.constant 0 : index
    %0 = vector.load %arg2[%c0, %c0_0] : memref<32x16xf32, #tpu.memory_space<vmem>>, vector<32x16xf32>
    %cst = arith.constant dense<0xFF800000> : vector<16xf32>
    %1 = vector.multi_reduction <maximumf>, %0, %cst [0] : vector<32x16xf32> to vector<16xf32>
    %2 = vector.shape_cast %1 : vector<16xf32> to vector<1x16xf32>
    %3 = tpu.iota {dimensions = array<i32: 0>} : vector<32x16xi32>
    %4 = vector.broadcast %2 : vector<1x16xf32> to vector<32x16xf32>
    %5 = arith.cmpf oeq, %0, %4 : vector<32x16xf32>
    %c32_i32 = arith.constant 32 : i32
    %6 = vector.broadcast %c32_i32 : i32 to vector<32x16xi32>
    %7 = arith.select %5, %3, %6 : vector<32x16xi1>, vector<32x16xi32>
    %cst_1 = arith.constant dense<2147483647> : vector<16xi32>
    %8 = vector.multi_reduction <minsi>, %7, %cst_1 [0] : vector<32x16xi32> to vector<16xi32>
    %9 = vector.shape_cast %8 : vector<16xi32> to vector<1x16xi32>
    %c1_i32 = arith.constant 1 : i32
    %10 = tpu.dynamic_rotate %9 by %c1_i32 dim 1 : vector<1x16xi32>, i32 -> vector<1x16xi32>
    %11 = tpu.iota {dimensions = array<i32: 1>} : vector<1x16xi32>
    %c0_i32 = arith.constant 0 : i32
    %12 = vector.broadcast %c0_i32 : i32 to vector<1x16xi32>
    %13 = arith.cmpi eq, %11, %12 : vector<1x16xi32>
    %c1_i32_2 = arith.constant 1 : i32
    %14 = arith.addi %c1_i32_2, %arg0 : i32
    %15 = arith.index_cast %14 : i32 to index
    %16 = memref.load %arg1[%15] : memref<2xi32, #tpu.memory_space<smem>>
    %17 = vector.broadcast %16 : i32 to vector<1x16xi32>
    %18 = arith.select %13, %17, %10 : vector<1x16xi1>, vector<1x16xi32>
    %c0_3 = arith.constant 0 : index
    %19 = memref.load %arg1[%c0_3] : memref<2xi32, #tpu.memory_space<smem>>
    %c16_i32 = arith.constant 16 : i32
    %20 = arith.muli %arg0, %c16_i32 : i32
    %21 = vector.broadcast %20 : i32 to vector<1x16xi32>
    %22 = arith.addi %11, %21 : vector<1x16xi32>
    %23 = arith.cmpi ne, %9, %18 : vector<1x16xi32>
    %c0_i32_4 = arith.constant 0 : i32
    %24 = vector.broadcast %c0_i32_4 : i32 to vector<1x16xi32>
    %25 = arith.cmpi ne, %9, %24 : vector<1x16xi32>
    %26 = arith.andi %23, %25 : vector<1x16xi1>
    %27 = vector.broadcast %19 : i32 to vector<1x16xi32>
    %28 = arith.cmpi slt, %22, %27 : vector<1x16xi32>
    %29 = arith.andi %26, %28 : vector<1x16xi1>
    %c-1_i32 = arith.constant -1 : i32
    %30 = vector.broadcast %c-1_i32 : i32 to vector<1x16xi32>
    %31 = arith.select %29, %9, %30 : vector<1x16xi1>, vector<1x16xi32>
    %c0_5 = arith.constant 0 : index
    %c0_6 = arith.constant 0 : index
    %32 = vector.load %arg3[%c0_5, %c0_6] : memref<1x16xi32, #tpu.memory_space<vmem>>, vector<1x16xi32>
    tpu.vector_store %arg3[%c0_5, %c0_6], %31 {strides = array<i32>} : memref<1x16xi32, #tpu.memory_space<vmem>>, vector<1x16xi32>,
    return
  }
  func.func @transform_0(%arg0: i32, %arg1: memref<2xi32, #tpu.memory_space<smem>>) -> (i32, i32) {
    %c0_i32 = arith.constant 0 : i32
    %c0_i32_0 = arith.constant 0 : i32
    return %c0_i32, %arg0 : i32, i32
  }
  func.func @transform_1(%arg0: i32, %arg1: memref<2xi32, #tpu.memory_space<smem>>) -> (i32, i32) {
    %c0_i32 = arith.constant 0 : i32
    %c0_i32_0 = arith.constant 0 : i32
    return %c0_i32, %arg0 : i32, i32
  }
}

</mosaic_0001>

<bundles_post_ra>
// kernel: greedy_ctc_packed.1
= control target key start
LH: loop header
LB: loop body
LE: loop exit
PB: predicated region body
PF: predicated region fallthrough
CT: control target
= control target key end

     0   :  { %s158_s12 = smov [#allocation3]   ;;  %s203_s0 = inlined_call_operand.vmem [shape: s32[2], index: 0, kind: input, shape index: {}]   ;;  %s204_s1 = inlined_call_operand.vmem [shape: f32[32,16], index: 1, kind: input, shape index: {}]   ;;  %s205_s2 = inlined_call_operand.hbm [shape: s32[1,16], index: 2, kind: output, shape index: {}]  }
   0x1   :  { %s8_s11 = sshll.u32 %s203_s0, 4  ;;  %s9_s11 = int_to_ptr.vmem [resolvable:$true] %s8_s11 }
   0x2   :  { %11 = dma.vmem_to_smem %s9_s11, 16, %s158_s12, [#allocation2] }
   0x3   :  { %154 = dma.done.wait [#allocation2], 16 }
   0x4   :  { %155 = vsyncadd [#allocation2], 4294967280 }
   0x5   :  { %14 = sfence }
   0x6   :  { %v18_v0 = vld [vmem:[%s204_s1] sm:$0xff]  ;;  %v19_v1 = vld [vmem:[%s204_s1 + $0x8] sm:$0xff]  ;;  %v20_v2 = vld [vmem:[%s204_s1 + $0x10] sm:$0xff]  ;;  %vm22_vm0 = vcmask 130048  }
   0x7   :  { %v21_v3 = vld [vmem:[%s204_s1 + $0x18] sm:$0xff]  ;;  %v23_v4 = vsel %vm22_vm0, %v18_v0, -inf  ;;  %v24_v5 = vsel %vm22_vm0, %v19_v1, -inf  ;;  %v25_v6 = vsel %vm22_vm0, %v20_v2, -inf }
   0x8   :  { %15 = vsyncpa [#allocation5], 0  ;;  %v26_v7 = vsel %vm22_vm0, %v21_v3, -inf  ;;  %v27_v8 = vmax.f32 %v23_v4, %v24_v5  ;;  %v36_v12 = vlaneseq  ;;  %s159_s1 = smov 16   ;;  %vm68_vm11 = vcmask 1047680   ;;  %s160_s20 = smov 113  }
   0x9   :  { %v28_v9 = vmax.f32 %v25_v6, %v26_v7  ;;  %s113_s21 = sld [smem:[#allocation3 + $0x1]]  ;;  %s161_s23 = smov [#allocation4]  }
   0xa   :  { %v37_v15 = vshrl.u32 %v36_v12, 7  ;;  %s84_s22 = sld [smem:[#allocation3]]  ;;  %v76_v43 = vand.u32 127, %v36_v12  ;;  %s102_s24 = sshll.u32 %s161_s23, 4  ;;  %s103_s24 = int_to_ptr.vmem [resolvable:$true] %s102_s24 }
   0xb   :  { %v29_v10 = vmax.f32 %v27_v8, %v28_v9  ;;  %s104_s27 = sshll.u32 %s205_s2, 4  ;;  %s105_s27 = int_to_ptr.hbm [resolvable:$true] %s104_s27 }
   0xc   :  { %v38_v18 = vadd.s32 8, %v37_v15  ;;  %v39_v19 = vadd.s32 16, %v37_v15  ;;  %v40_v20 = vadd.s32 24, %v37_v15  ;;  %vm77_vm12 = vcmp.eq.s32.totalorder %v76_v43, 0 }
   0xd   :  { %v30_v11 = vrot.slane %v29_v10, 4 }
   0xf   :  { %v31_v13 = vmax.f32 %v29_v10, %v30_v11  ;;  %v80_v44 = vstv %s113_s21 }
  0x10   :  { %v91_v45 = vstv %s84_s22 }
  0x11   :  { %v32_v14 = vrot.slane %v31_v13, 2  ;;  %vm92_vm14 = vcmp.lt.s32.totalorder %v76_v43, %v91_v45 }
  0x13   :  { %v33_v16 = vmax.f32 %v31_v13, %v32_v14 }
  0x15   :  { %v34_v17 = vrot.slane %v33_v16, 1 }
  0x17   :  { %v35_v21 = vmax.f32 %v33_v16, %v34_v17 }
  0x19   :  { %vm41_vm1 = vcmp.eq.f32.partialorder %v18_v0, %v35_v21  ;;  %vm42_vm2 = vcmp.eq.f32.partialorder %v19_v1, %v35_v21  ;;  %vm43_vm3 = vcmp.eq.f32.partialorder %v20_v2, %v35_v21  ;;  %vm44_vm4 = vcmp.eq.f32.partialorder %v21_v3, %v35_v21 }
  0x1a   :  { %v45_v22 = vsel %vm41_vm1, %v37_v15, 32  ;;  %v46_v23 = vsel %vm42_vm2, %v38_v18, 32  ;;  %v47_v24 = vsel %vm43_vm3, %v39_v19, 32  ;;  %v48_v25 = vsel %vm44_vm4, %v40_v20, 32 }
  0x1b   :  { %v49_v26 = vsel %vm22_vm0, %v45_v22, 2147483647  ;;  %v50_v27 = vsel %vm22_vm0, %v46_v23, 2147483647  ;;  %v51_v28 = vsel %vm22_vm0, %v47_v24, 2147483647 }
  0x1c   :  { %v52_v29 = vsel %vm22_vm0, %v48_v25, 2147483647  ;;  %vm53_vm5 = vcmp.lt.s32.totalorder %v49_v26, %v50_v27  ;;  %vm95_vm1 = vcmask 122880  }
  0x1d   :  { %v54_v30 = vsel %vm53_vm5, %v49_v26, %v50_v27  ;;  %vm55_vm6 = vcmp.lt.s32.totalorder %v51_v28, %v52_v29 }
  0x1e   :  { %v56_v31 = vsel %vm55_vm6, %v51_v28, %v52_v29 }
  0x1f   :  { %vm57_vm7 = vcmp.lt.s32.totalorder %v54_v30, %v56_v31 }
  0x20   :  { %v58_v32 = vsel %vm57_vm7, %v54_v30, %v56_v31 }
  0x21   :  { %v59_v33 = vrot.slane %v58_v32, 4 }
  0x23   :  { %vm60_vm8 = vcmp.lt.s32.totalorder %v58_v32, %v59_v33 }
  0x24   :  { %v61_v34 = vsel %vm60_vm8, %v58_v32, %v59_v33 }
  0x25   :  { %v62_v35 = vrot.slane %v61_v34, 2 }
  0x27   :  { %vm63_vm9 = vcmp.lt.s32.totalorder %v61_v34, %v62_v35 }
  0x28   :  { %v64_v36 = vsel %vm63_vm9, %v61_v34, %v62_v35 }
  0x29   :  { %v65_v37 = vrot.slane %v64_v36, 1 }
  0x2b   :  { %vm66_vm10 = vcmp.lt.s32.totalorder %v64_v36, %v65_v37 }
  0x2c   :  { %v67_v38 = vsel %vm66_vm10, %v64_v36, %v65_v37 }
  0x2d   :  { %69 = vrot.lane.b32.xlu0 %v67_v38, %s159_s1  ;;  %vm89_vm13 = vcmp.ne.s32.totalorder %v67_v38, 0 }
  0x9f   :  { %v70_v39 = vpop.permute.xlu0 %69 }
  0xa0   :  { %v71_v40 = vsel %vm68_vm11, %v70_v39, %v67_v38 }
  0xa1   :  { %72 = vrot.lane.b32.xlu0 %v71_v40, %s159_s1 }
 0x113   :  { %v73_v41 = vpop.permute.xlu0 %72 }
 0x114   :  { %v74_v42 = vsel %vm68_vm11, %v73_v41, %v67_v38 }
 0x115   :  { %81 = vrot.lane.b32.xlu1 %v74_v42, %s160_s20 }
 0x187   :  { %v82_v46 = vpop.permute.xlu1 %81 }
 0x188   :  { %v83_v47 = vsel %vm77_vm12, %v80_v44, %v82_v46 }
 0x189   :  { %vm88_vm15 = vcmp.ne.s32.totalorder %v67_v38, %v83_v47 }
 0x18a   :  { %vm90_vm0 = vmand %vm88_vm15, %vm89_vm13 }
 0x18b   :  { %vm93_vm2 = vmand %vm90_vm0, %vm92_vm14 }
 0x18c   :  { %v94_v48 = vsel %vm93_vm2, %v67_v38, 4294967295 }
 0x18d   :  { %96 = vst.msk [vmem:[#allocation4] sm:$0x1] %vm95_vm1, %v94_v48 }
 0x18e   :  { %107 = dma.vmem_to_hbm [thread:$0]  %s103_s24, 16, %s105_s27, [#allocation5]  }
 0x18f   :  { %156 = dma.done.wait [#allocation5], 16  }
 0x190   :  { %157 = vsyncadd [#allocation5], 4294967280 }
 0x191   :  { %112 = vsyncpa [#allocation5], 1 }

</bundles_post_ra>
